<compile_context>
chip_gen: v7x
topology: tpu7x:2x2x1
jax: 0.10.0
libtpu: 0.0.40
codegen_flags: <defaults>
</compile_context>

<pallas_src>
import functools

import jax
import jax.numpy as jnp
from jax import lax
from jax.experimental import pallas as pl
from jax.experimental.pallas import tpu as pltpu


# ----------------------------------------------------------------------------
# Kernel A: attention map (convs + psi + sigmoid + depth-axis upsample)
# ----------------------------------------------------------------------------
def _alpha_kernel(fused_ref, w_ref, b_ref, pw_ref, pb_ref, ud_ref, alpha_ref,
                  *, dg, hgwg):
    # fused_ref: (K, S) with K = Cg + 8*Cin, S = Dg*Hg*Wg (spatial on lanes).
    # W_g (1x1x1) + W_x (k=2,s=2 via space-to-depth) fused into a single MXU matmul.
    h = jnp.dot(w_ref[...], fused_ref[...],
                preferred_element_type=jnp.float32)                 # (inter, S) f32 acc
    h = jnp.maximum(h + b_ref[...], 0.0)                            # folded bias + ReLU
    # psi: inter -> 1 projection on the VPU/XLU (broadcast-mul + sublane reduce).
    logits = jnp.sum(h * pw_ref[...], axis=0, keepdims=True) + pb_ref[...]   # (1, S)
    a = jax.nn.sigmoid(logits)                                      # (1, S)
    # Depth half of the separable trilinear x2 upsample (align_corners=False):
    #   (D, Dg) @ (Dg, Hg*Wg)  — tiny constant, MXU-trivial.
    a2 = a.reshape(dg, hgwg)                                        # (Dg, Hg*Wg)
    alpha_ref[...] = jnp.dot(ud_ref[...], a2,
                             preferred_element_type=jnp.float32)    # (D, Hg*Wg)


# ----------------------------------------------------------------------------
# Kernel B: gating (pure elementwise, HBM-bound, fully parallel grid)
# ----------------------------------------------------------------------------
def _gating_kernel(x_ref, a_ref, o_ref):
    # x_ref: (c_tile, s_tile), a_ref: (1, s_tile) -> broadcast over channels.
    o_ref[...] = x_ref[...] * a_ref[...]


# ----------------------------------------------------------------------------
# Trilinear-x2 upsample factors (PyTorch F.interpolate, align_corners=False)
# ----------------------------------------------------------------------------
def _upsample2_matrix(s_in):
    s_out = 2 * s_in
    o = jnp.arange(s_out, dtype=jnp.float32)
    src = jnp.maximum(0.0, (o + 0.5) * (s_in / s_out) - 0.5)
    i0 = jnp.clip(jnp.floor(src).astype(jnp.int32), 0, s_in - 1)
    i1 = jnp.minimum(i0 + 1, s_in - 1)
    l1 = src - i0.astype(jnp.float32)
    u = jnp.zeros((s_out, s_in), jnp.float32)
    u = u.at[jnp.arange(s_out), i0].add(1.0 - l1)
    u = u.at[jnp.arange(s_out), i1].add(l1)
    return u                                                        # (2*s_in, s_in)


def _interp_axis2(arr, axis):
    """x2 linear upsample (align_corners=False) along one axis, plain JAX."""
    s_in = arr.shape[axis]
    s_out = 2 * s_in
    o = jnp.arange(s_out, dtype=jnp.float32)
    src = jnp.maximum(0.0, (o + 0.5) * (s_in / s_out) - 0.5)
    i0 = jnp.clip(jnp.floor(src).astype(jnp.int32), 0, s_in - 1)
    i1 = jnp.minimum(i0 + 1, s_in - 1)
    l1 = src - i0.astype(jnp.float32)
    a0 = jnp.take(arr, i0, axis=axis)
    a1 = jnp.take(arr, i1, axis=axis)
    shape = [1] * arr.ndim
    shape[axis] = s_out
    l1 = l1.reshape(shape)
    return a0 * (1.0 - l1) + a1 * l1


def _vmem_budget(bytes_needed):
    # Explicit per-kernel budget (v5e scoped default is only 16 MiB); clamp so the request
    # stays compatible with the 64 MiB v7x part for the default tile caps.
    return int(min(100 * 2**20, max(32 * 2**20, bytes_needed + (8 << 20))))


# ----------------------------------------------------------------------------
# Wrapper
# ----------------------------------------------------------------------------
@functools.partial(jax.jit, static_argnames=("c_tile", "s_tile", "fused_dtype"))
def attention_gate_pallas(x, g, params, c_tile=None, s_tile=None,
                          fused_dtype=jnp.bfloat16):
    """x: (N, Cin, D, H, W)  g: (N, Cg, Dg, Hg, Wg)  ->  (N, Cin, D, H, W)."""
    N, Cin, D, H, W = x.shape
    _, Cg, Dg, Hg, Wg = g.shape
    assert (D, H, W) == (2 * Dg, 2 * Hg, 2 * Wg)
    S = Dg * Hg * Wg
    HgWg = Hg * Wg
    DHW = D * H * W
    C8 = Cin * 8
    K = Cg + C8
    inter = params["wg_w"].shape[0]

    # ---- tile selection for the (dominant, HBM-bound) gating kernel -------
    if c_tile is None:
        c_tile = Cin                       # full channel block by default
    assert Cin % c_tile == 0
    assert c_tile % 8 == 0 or c_tile == Cin, "c_tile must be a multiple of 8 (or == Cin)"
    if s_tile is None:
        tile_cap_bytes = 4 * 2**20         # ~4 MiB per x tile: big enough to amortize the
        if DHW * c_tile * 4 <= 2 * tile_cap_bytes:   # per-step overhead, small enough for v7x
            s_tile = DHW
        else:
            target = max(128, (tile_cap_bytes // (4 * c_tile)) // 128 * 128)
            s_tile = DHW                   # fallback: single spatial block
            for cand in range(target, 127, -128):
                if DHW % cand == 0:
                    s_tile = cand
                    break
    assert DHW % s_tile == 0
    assert s_tile % 128 == 0 or s_tile == DHW   # lane-dense, unmasked stores

    # ---- glue: lane-dense layouts (spatial last) ---------------------------
    g_t = g.reshape(N, Cg, S)                                   # free reshape
    # space-to-depth of x for the k=2/s=2 conv; channel order (Cin, kd, kh, kw).
    # TODO(synk): compute this contraction inside kernel A from x to remove this HBM copy.
    xs_t = x.reshape(N, Cin, Dg, 2, Hg, 2, Wg, 2)
    xs_t = xs_t.transpose(0, 1, 3, 5, 7, 2, 4, 6).reshape(N, C8, S)
    fused = jnp.concatenate([g_t, xs_t], axis=1).astype(fused_dtype)   # (N, K, S)
    # x / out streamed lane-dense as (N, Cin, D*H*W); a single relayout copy when W < 128.
    x3 = x.reshape(N, Cin, DHW)

    # conv weights -> fused matmul weight (W @ X layout) with folded bias
    wg2 = params["wg_w"].reshape(inter, Cg)
    wx2 = params["wx_w"].reshape(inter, C8)
    w = jnp.concatenate([wg2, wx2], axis=1).astype(fused_dtype)  # (inter, K)
    b = (params["wg_b"] + params["wx_b"]).reshape(inter, 1)      # f32, folded
    pw = params["psi_w"].reshape(inter, 1)
    pb = params["psi_b"].reshape(1, 1)
    ud = _upsample2_matrix(Dg)                                   # (D, Dg), tiny

    # ---- kernel A: attention map per batch element -------------------------
    itm = jnp.dtype(fused_dtype).itemsize
    vmem_a = _vmem_budget(2 * K * S * itm + 2 * D * HgWg * 4
                          + 2 * inter * (K + 2) * 4 + 2 * D * Dg * 4)
    alpha_d = pl.pallas_call(
        functools.partial(_alpha_kernel, dg=Dg, hgwg=HgWg),
        out_shape=jax.ShapeDtypeStruct((N, D, HgWg), jnp.float32),
        grid_spec=pltpu.PrefetchScalarGridSpec(
            num_scalar_prefetch=0,
            grid=(N,),
            in_specs=[
                pl.BlockSpec((None, K, S), lambda n: (n, 0, 0)),     # fused g || s2d(x)
                pl.BlockSpec((inter, K), lambda n: (0, 0)),          # fused conv weight
                pl.BlockSpec((inter, 1), lambda n: (0, 0)),          # folded conv bias
                pl.BlockSpec((inter, 1), lambda n: (0, 0)),          # psi weight
                pl.BlockSpec((1, 1), lambda n: (0, 0)),              # psi bias
                pl.BlockSpec((D, Dg), lambda n: (0, 0)),             # depth upsample matrix
            ],
            out_specs=pl.BlockSpec((None, D, HgWg), lambda n: (n, 0, 0)),
        ),
        compiler_params=pltpu.CompilerParams(
            dimension_semantics=("parallel",),
            vmem_limit_bytes=vmem_a),
    )(fused, w, b, pw, pb, ud)

    # ---- in-plane (H, W) x2 upsample on the tiny alpha array (XLA glue) ----
    # alpha_d is only |x|/(4*Cin) bytes; no Mosaic-friendly lane interleave exists, so this
    # stays outside the kernels (negligible HBM traffic, no 16 MiB kron constant).
    a = alpha_d.reshape(N, D, Hg, Wg)
    a = _interp_axis2(a, 2)                                      # (N, D, H, Wg)
    a = _interp_axis2(a, 3)                                      # (N, D, H, W)
    alpha_f = a.reshape(N, 1, DHW)

    # ---- kernel B: gating (x * alpha), fully parallel, lane-dense ----------
    vmem_b = _vmem_budget(4 * c_tile * s_tile * 4 + 2 * s_tile * 4)
    out3 = pl.pallas_call(
        _gating_kernel,
        out_shape=jax.ShapeDtypeStruct((N, Cin, DHW), jnp.float32),
        grid_spec=pltpu.PrefetchScalarGridSpec(
            num_scalar_prefetch=0,
            grid=(N, Cin // c_tile, DHW // s_tile),
            in_specs=[
                pl.BlockSpec((None, c_tile, s_tile), lambda n, c, s: (n, c, s)),  # x
                pl.BlockSpec((None, 1, s_tile), lambda n, c, s: (n, 0, s)),       # alpha
            ],
            out_specs=pl.BlockSpec((None, c_tile, s_tile), lambda n, c, s: (n, c, s)),
        ),
        compiler_params=pltpu.CompilerParams(
            dimension_semantics=("parallel", "parallel", "parallel"),
            vmem_limit_bytes=vmem_b),
    )(x3, alpha_f)

    return out3.reshape(N, Cin, D, H, W)


# ----------------------------------------------------------------------------
# Plain-JAX reference (for correctness check)
# ----------------------------------------------------------------------------
def attention_gate_reference(x, g, params):
    dn = lambda lhs, rhs: lax.conv_dimension_numbers(lhs.shape, rhs.shape,
                                                     ("NCDHW", "OIDHW", "NCDHW"))
    g_conv = lax.conv_general_dilated(g, params["wg_w"], (1, 1, 1), "VALID",
                                      dimension_numbers=dn(g, params["wg_w"]))
    g_conv = g_conv + params["wg_b"].reshape(1, -1, 1, 1, 1)
    x_conv = lax.conv_general_dilated(x, params["wx_w"], (2, 2, 2), "VALID",
                                      dimension_numbers=dn(x, params["wx_w"]))
    x_conv = x_conv + params["wx_b"].reshape(1, -1, 1, 1, 1)
    h = jax.nn.relu(g_conv + x_conv)
    psi = lax.conv_general_dilated(h, params["psi_w"], (1, 1, 1), "VALID",
                                   dimension_numbers=dn(h, params["psi_w"]))
    att = jax.nn.sigmoid(psi + params["psi_b"].reshape(1, -1, 1, 1, 1))
    att = _interp_axis2(att, 2)
    att = _interp_axis2(att, 3)
    att = _interp_axis2(att, 4)
    return x * att


# ----------------------------------------------------------------------------
if __name__ == "__main__":
    # Small shapes consistent with the module: x at full resolution, g at half.
    N, Cin, Cg, Cinter = 2, 8, 6, 8
    D, H, W = 16, 16, 32
    Dg, Hg, Wg = D // 2, H // 2, W // 2

    key = jax.random.PRNGKey(0)
    ks = jax.random.split(key, 8)
    params = {
        "wg_w": 0.1 * jax.random.normal(ks[0], (Cinter, Cg, 1, 1, 1), jnp.float32),
        "wg_b": 0.1 * jax.random.normal(ks[1], (Cinter,), jnp.float32),
        "wx_w": 0.1 * jax.random.normal(ks[2], (Cinter, Cin, 2, 2, 2), jnp.float32),
        "wx_b": 0.1 * jax.random.normal(ks[3], (Cinter,), jnp.float32),
        "psi_w": 0.1 * jax.random.normal(ks[4], (1, Cinter, 1, 1, 1), jnp.float32),
        "psi_b": 0.1 * jax.random.normal(ks[5], (1,), jnp.float32),
    }
    x = jax.random.normal(ks[6], (N, Cin, D, H, W), jnp.float32)
    g = jax.random.normal(ks[7], (N, Cg, Dg, Hg, Wg), jnp.float32)

    ref = jax.block_until_ready(attention_gate_reference(x, g, params))

    # Exact-path check (f32 fused operand): proves conv fusion, s2d ordering and the
    # upsample factors are numerically exact.
    out32 = jax.block_until_ready(
        attention_gate_pallas(x, g, params, fused_dtype=jnp.float32))
    if not jnp.allclose(out32, ref, atol=2e-4, rtol=2e-4):
        raise AssertionError(
            f"f32 path mismatch: max abs diff {float(jnp.max(jnp.abs(out32 - ref)))}")

    # Default path (bf16-streamed fused operand, halves the s2d HBM traffic).  The attention
    # map error from bf16 matmul inputs is O(1e-3) absolute on the gated output.
    out = jax.block_until_ready(attention_gate_pallas(x, g, params))
    if not jnp.allclose(out, ref, atol=1e-2, rtol=1e-2):
        raise AssertionError(
            f"bf16 path mismatch: max abs diff {float(jnp.max(jnp.abs(out - ref)))}")

    print("KERNEL_OK")
</pallas_src>

<mosaic_0001>
module attributes {stable_mosaic.version = 11 : i64} {
  func.func private @main(%arg0: i32) attributes {dimension_semantics = [#tpu.dimension_semantics<core_parallel>], iteration_bounds = array<i64: 2>, tpu.core_type = #tpu.core_type<sc_scalar_subcore>, window_params = []} {
    return
  }
}

module attributes {stable_mosaic.version = 11 : i64} {
  func.func private @main(%arg0: i32) attributes {dimension_semantics = [#tpu.dimension_semantics<core_parallel>], iteration_bounds = array<i64: 2>, tpu.core_type = #tpu.core_type<sc_scalar_subcore>, window_params = []} {
    return
  }
}

module attributes {stable_mosaic.version = 11 : i64} {
  func.func @_alpha_kernel(%arg0: i32, %arg1: memref<1x70x1024xf32, #tpu.memory_space<vmem>>, %arg2: memref<8x70xf32, #tpu.memory_space<vmem>>, %arg3: memref<8x1xf32, #tpu.memory_space<vmem>>, %arg4: memref<8x1xf32, #tpu.memory_space<vmem>>, %arg5: memref<1x1xf32, #tpu.memory_space<vmem>>, %arg6: memref<16x8xf32, #tpu.memory_space<vmem>>, %arg7: memref<1x16x128xf32, #tpu.memory_space<vmem>>) attributes {dimension_semantics = [#tpu.dimension_semantics<parallel>], iteration_bounds = array<i64: 2>, scalar_prefetch = 0 : i64, scratch_operands = 0 : i64, tpu.core_type = #tpu.core_type<tc>, window_params = [{transform_indices = @transform_0, window_bounds = array<i64: 1, 70, 1024>}, {pipeline_mode = #tpu.pipeline_mode<synchronous>, transform_indices = @transform_1, window_bounds = array<i64: 8, 70>}, {pipeline_mode = #tpu.pipeline_mode<synchronous>, transform_indices = @transform_2, window_bounds = array<i64: 8, 1>}, {pipeline_mode = #tpu.pipeline_mode<synchronous>, transform_indices = @transform_3, window_bounds = array<i64: 8, 1>}, {pipeline_mode = #tpu.pipeline_mode<synchronous>, transform_indices = @transform_4, window_bounds = array<i64: 1, 1>}, {pipeline_mode = #tpu.pipeline_mode<synchronous>, transform_indices = @transform_5, window_bounds = array<i64: 16, 8>}, {transform_indices = @transform_6, window_bounds = array<i64: 1, 16, 128>}]} {
    %c0 = arith.constant 0 : index
    %c0_0 = arith.constant 0 : index
    %0 = vector.load %arg2[%c0, %c0_0] : memref<8x70xf32, #tpu.memory_space<vmem>>, vector<8x70xf32>
    %c0_1 = arith.constant 0 : index
    %c0_2 = arith.constant 0 : index
    %c0_3 = arith.constant 0 : index
    %1 = vector.load %arg1[%c0_1, %c0_2, %c0_3] : memref<1x70x1024xf32, #tpu.memory_space<vmem>>, vector<1x70x1024xf32>
    %2 = vector.shape_cast %1 : vector<1x70x1024xf32> to vector<70x1024xf32>
    %cst = arith.constant dense<0.000000e+00> : vector<8x1024xf32>
    %3 = tpu.matmul %0, %2, %cst {dimension_numbers = #tpu.dot_dimension_numbers<[1], [0], [0], [1], [0, 0, 1, 1], [], []>} : vector<8x70xf32>, vector<70x1024xf32>, vector<8x1024xf32> -> vector<8x1024xf32>
    %c0_4 = arith.constant 0 : index
    %c0_5 = arith.constant 0 : index
    %4 = vector.load %arg3[%c0_4, %c0_5] : memref<8x1xf32, #tpu.memory_space<vmem>>, vector<8x1xf32>
    %5 = vector.broadcast %4 : vector<8x1xf32> to vector<8x1024xf32>
    %6 = arith.addf %3, %5 : vector<8x1024xf32>
    %cst_6 = arith.constant 0.000000e+00 : f32
    %7 = vector.broadcast %cst_6 : f32 to vector<8x1024xf32>
    %8 = arith.maximumf %6, %7 : vector<8x1024xf32>
    %c0_7 = arith.constant 0 : index
    %c0_8 = arith.constant 0 : index
    %9 = vector.load %arg4[%c0_7, %c0_8] : memref<8x1xf32, #tpu.memory_space<vmem>>, vector<8x1xf32>
    %10 = vector.broadcast %9 : vector<8x1xf32> to vector<8x1024xf32>
    %11 = arith.mulf %8, %10 : vector<8x1024xf32>
    %cst_9 = arith.constant dense<0.000000e+00> : vector<1024xf32>
    %12 = vector.multi_reduction <add>, %11, %cst_9 [0] : vector<8x1024xf32> to vector<1024xf32>
    %13 = vector.shape_cast %12 : vector<1024xf32> to vector<1x1024xf32>
    %c0_10 = arith.constant 0 : index
    %c0_11 = arith.constant 0 : index
    %14 = vector.load %arg5[%c0_10, %c0_11] : memref<1x1xf32, #tpu.memory_space<vmem>>, vector<1x1xf32>
    %15 = vector.broadcast %14 : vector<1x1xf32> to vector<1x1024xf32>
    %16 = arith.addf %13, %15 : vector<1x1024xf32>
    %17 = arith.negf %16 : vector<1x1024xf32>
    %18 = math.exp %17 : vector<1x1024xf32>
    %cst_12 = arith.constant 1.000000e+00 : f32
    %19 = vector.broadcast %cst_12 : f32 to vector<1x1024xf32>
    %20 = arith.addf %19, %18 : vector<1x1024xf32>
    %21 = arith.divf %19, %20 : vector<1x1024xf32>
    %22 = vector.shape_cast %21 : vector<1x1024xf32> to vector<8x128xf32>
    %c0_13 = arith.constant 0 : index
    %c0_14 = arith.constant 0 : index
    %23 = vector.load %arg6[%c0_13, %c0_14] : memref<16x8xf32, #tpu.memory_space<vmem>>, vector<16x8xf32>
    %cst_15 = arith.constant dense<0.000000e+00> : vector<16x128xf32>
    %24 = tpu.matmul %23, %22, %cst_15 {dimension_numbers = #tpu.dot_dimension_numbers<[1], [0], [0], [1], [0, 0, 1, 1], [], []>} : vector<16x8xf32>, vector<8x128xf32>, vector<16x128xf32> -> vector<16x128xf32>
    %c0_16 = arith.constant 0 : index
    %c0_17 = arith.constant 0 : index
    %c0_18 = arith.constant 0 : index
    %25 = vector.load %arg7[%c0_16, %c0_17, %c0_18] : memref<1x16x128xf32, #tpu.memory_space<vmem>>, vector<1x16x128xf32>
    %26 = vector.shape_cast %25 : vector<1x16x128xf32> to vector<16x128xf32>
    %27 = vector.shape_cast %24 : vector<16x128xf32> to vector<1x16x128xf32>
    tpu.vector_store %arg7[%c0_16, %c0_17, %c0_18], %27 {strides = array<i32>} : memref<1x16x128xf32, #tpu.memory_space<vmem>>, vector<1x16x128xf32>,
    return
  }
  func.func @transform_0(%arg0: i32) -> (i32, i32, i32) {
    %c0_i32 = arith.constant 0 : i32
    %c0_i32_0 = arith.constant 0 : i32
    %c0_i32_1 = arith.constant 0 : i32
    return %arg0, %c0_i32, %c0_i32_0 : i32, i32, i32
  }
  func.func @transform_1(%arg0: i32) -> (i32, i32) {
    %c0_i32 = arith.constant 0 : i32
    %c0_i32_0 = arith.constant 0 : i32
    %c0_i32_1 = arith.constant 0 : i32
    return %c0_i32, %c0_i32_0 : i32, i32
  }
  func.func @transform_2(%arg0: i32) -> (i32, i32) {
    %c0_i32 = arith.constant 0 : i32
    %c0_i32_0 = arith.constant 0 : i32
    %c0_i32_1 = arith.constant 0 : i32
    return %c0_i32, %c0_i32_0 : i32, i32
  }
  func.func @transform_3(%arg0: i32) -> (i32, i32) {
    %c0_i32 = arith.constant 0 : i32
    %c0_i32_0 = arith.constant 0 : i32
    %c0_i32_1 = arith.constant 0 : i32
    return %c0_i32, %c0_i32_0 : i32, i32
  }
  func.func @transform_4(%arg0: i32) -> (i32, i32) {
    %c0_i32 = arith.constant 0 : i32
    %c0_i32_0 = arith.constant 0 : i32
    %c0_i32_1 = arith.constant 0 : i32
    return %c0_i32, %c0_i32_0 : i32, i32
  }
  func.func @transform_5(%arg0: i32) -> (i32, i32) {
    %c0_i32 = arith.constant 0 : i32
    %c0_i32_0 = arith.constant 0 : i32
    %c0_i32_1 = arith.constant 0 : i32
    return %c0_i32, %c0_i32_0 : i32, i32
  }
  func.func @transform_6(%arg0: i32) -> (i32, i32, i32) {
    %c0_i32 = arith.constant 0 : i32
    %c0_i32_0 = arith.constant 0 : i32
    %c0_i32_1 = arith.constant 0 : i32
    return %arg0, %c0_i32, %c0_i32_0 : i32, i32, i32
  }
}

module attributes {stable_mosaic.version = 11 : i64} {
  func.func @_gating_kernel(%arg0: i32, %arg1: i32, %arg2: i32, %arg3: memref<1x8x8192xf32, #tpu.memory_space<vmem>>, %arg4: memref<1x1x8192xf32, #tpu.memory_space<vmem>>, %arg5: memref<1x8x8192xf32, #tpu.memory_space<vmem>>) attributes {dimension_semantics = [#tpu.dimension_semantics<parallel>, #tpu.dimension_semantics<parallel>, #tpu.dimension_semantics<parallel>], iteration_bounds = array<i64: 2, 1, 1>, scalar_prefetch = 0 : i64, scratch_operands = 0 : i64, tpu.core_type = #tpu.core_type<tc>, window_params = [{transform_indices = @transform_0, window_bounds = array<i64: 1, 8, 8192>}, {transform_indices = @transform_1, window_bounds = array<i64: 1, 1, 8192>}, {transform_indices = @transform_2, window_bounds = array<i64: 1, 8, 8192>}]} {
    %c0 = arith.constant 0 : index
    %c0_0 = arith.constant 0 : index
    %c0_1 = arith.constant 0 : index
    %0 = vector.load %arg3[%c0, %c0_0, %c0_1] : memref<1x8x8192xf32, #tpu.memory_space<vmem>>, vector<1x8x8192xf32>
    %1 = vector.shape_cast %0 : vector<1x8x8192xf32> to vector<8x8192xf32>
    %c0_2 = arith.constant 0 : index
    %c0_3 = arith.constant 0 : index
    %c0_4 = arith.constant 0 : index
    %2 = vector.load %arg4[%c0_2, %c0_3, %c0_4] : memref<1x1x8192xf32, #tpu.memory_space<vmem>>, vector<1x1x8192xf32>
    %3 = vector.shape_cast %2 : vector<1x1x8192xf32> to vector<1x8192xf32>
    %4 = vector.broadcast %3 : vector<1x8192xf32> to vector<8x8192xf32>
    %5 = arith.mulf %1, %4 : vector<8x8192xf32>
    %c0_5 = arith.constant 0 : index
    %c0_6 = arith.constant 0 : index
    %c0_7 = arith.constant 0 : index
    %6 = vector.load %arg5[%c0_5, %c0_6, %c0_7] : memref<1x8x8192xf32, #tpu.memory_space<vmem>>, vector<1x8x8192xf32>
    %7 = vector.shape_cast %6 : vector<1x8x8192xf32> to vector<8x8192xf32>
    %8 = vector.shape_cast %5 : vector<8x8192xf32> to vector<1x8x8192xf32>
    tpu.vector_store %arg5[%c0_5, %c0_6, %c0_7], %8 {strides = array<i32>} : memref<1x8x8192xf32, #tpu.memory_space<vmem>>, vector<1x8x8192xf32>,
    return
  }
  func.func @transform_0(%arg0: i32, %arg1: i32, %arg2: i32) -> (i32, i32, i32) {
    %c0_i32 = arith.constant 0 : i32
    return %arg0, %arg1, %arg2 : i32, i32, i32
  }
  func.func @transform_1(%arg0: i32, %arg1: i32, %arg2: i32) -> (i32, i32, i32) {
    %c0_i32 = arith.constant 0 : i32
    %c0_i32_0 = arith.constant 0 : i32
    return %arg0, %c0_i32, %arg2 : i32, i32, i32
  }
  func.func @transform_2(%arg0: i32, %arg1: i32, %arg2: i32) -> (i32, i32, i32) {
    %c0_i32 = arith.constant 0 : i32
    return %arg0, %arg1, %arg2 : i32, i32, i32
  }
}

</mosaic_0001>

<bundles_post_ra>
// kernel: attention_gate_pallas.2
= control target key start
LH: loop header
LB: loop body
LE: loop exit
PB: predicated region body
PF: predicated region fallthrough
CT: control target
= control target key end

     0   :  { %s1181_s23 = smov 0   ;;  %s1339_s0 = inlined_call_operand.vmem [shape: f32[2,70,1024], index: 0, kind: input, shape index: {}]   ;;  %s1340_s1 = inlined_call_operand.vmem [shape: f32[8,70], index: 1, kind: input, shape index: {}]   ;;  %s1341_s2 = inlined_call_operand.vmem [shape: f32[8,1], index: 2, kind: input, shape index: {}]   ;;  %s1342_s3 = inlined_call_operand.vmem [shape: f32[8,1], index: 3, kind: input, shape index: {}]   ;;  %s1343_s4 = inlined_call_operand.<no memory space> [shape: f32[1,1], index: 4, kind: input, shape index: {}]   ;;  %s1344_s5 = inlined_call_operand.vmem [shape: f32[16,8], index: 5, kind: input, shape index: {}]   ;;  %s1345_s6 = inlined_call_operand.vmem [shape: f32[2,16,128], index: 6, kind: output, shape index: {}]  }
   0x1   :  { %v11_v0 = vstv %s1343_s4 }
   0x2   :  { %12 = vst [vmem:[#allocation2] sm:$0x1] %v11_v0 }
   0x3 LB: > { %s981_s24 = sadd.s32 4294967295, %s1138_s23   ;;  %p985_p0 = scmp.ge.s32.totalorder %s1138_s23, 1  ;;  %s1138_s23 = sphi %s1181_s23, %s18_s23  }
   0x4   : > { %p214_p1 = scmp.lt.s32.totalorder %s1138_s23, 3 }
   0x6   : > { %p215_p2 = pnand %p985_p0, %p214_p1 }
   0x7   : > { %p244_p3 = scmp.lt.s32.totalorder (!%p215_p2), %s981_s24, 1  ;;  %v1140_v1 = vmov (!%p215_p2), 0.0   ;;  %v327_v2 = vld [vmem:[%s1341_s2] sm:$0xff] (!%p215_p2)  ;;  %v1141_v4 = vmov (!%p215_p2), 0   ;;  %vm337_vm0 = vcmask (!%p215_p2), 1045504   ;;  %vm333_vm1 = vcmask (!%p215_p2), 572416  }
   0x8   : > { %218 = sbr.rel (%p215_p2) target bundleno = 547 (0x223), region = 44  ;;  %426 = vmatprep.mubr.f32.mxu0 (!%p215_p2), %v1140_v1  ;;  %497 = vmatprep.mubr.f32.mxu1 (!%p215_p2), %v1140_v1  ;;  %v654_v5 = vld [vmem:[%s1342_s3] sm:$0xff] (!%p215_p2)  ;;  %vm842_vm2 = vcmask (!%p215_p2), 64512  }
   0x9   : > { %v716_v3 = vld [vmem:[#allocation2] sm:$0x1] (!%p215_p2)  ;;  %1098 = vset.pattern.permute.xlu0 (!%p215_p2), %v1141_v4  ;;  %1099 = vset.pattern.permute.xlu1 (!%p215_p2), %v1141_v4 }
   0xa   : > { %330 = vperm.xlu0 (!%p215_p2), %1098, %v327_v2   ;;  %719 = vperm.xlu1 (!%p215_p2), %1099, %v716_v3   ;;  %v1247_v61 = vld [vmem:[%s1340_s1] sm:$0xff] (!%p215_p2) }
   0xe   : > { %657 = vperm.xlu0 (!%p215_p2), %1098, %v654_v5  }
   0xf   : > { %s1347_s24 = smov (!%p244_p3, %s981_s24), 1 }
  0x10   : > { %s1086_s26 = smul.u32 576, %s1347_s24  ;;  %s1013_s14 = sshll.u32 %s1347_s24, 4 }
  0x11   : > { %s253_s17 = scalar_lea.vmem %s1345_s6, %s1013_s14 }
  0x12   : > { %s1203_s7 = scalar_lea.vmem %s1339_s0, %s1086_s26 }
  0x13   : > { %v256_v6 = vld [vmem:[%s1203_s7 + $0x8] sm:$0xff]  ;;  %v258_v8 = vld [vmem:[%s1203_s7 + $0x18] sm:$0xff]  ;;  %v255_v11 = vld [vmem:[%s1203_s7] sm:$0xff] }
  0x14   : > { %v264_v7 = vld [vmem:[%s1203_s7 + $0x48] sm:$0xff]  ;;  %v266_v10 = vld [vmem:[%s1203_s7 + $0x58] sm:$0xff]  ;;  %v263_v12 = vld [vmem:[%s1203_s7 + $0x40] sm:$0xff] }
  0x15   : > { %v1022_v9 = vpack.c.bf16 %v264_v7, %v256_v6  ;;  %v1038_v13 = vpack.c.bf16 %v266_v10, %v258_v8  ;;  %v1024_v14 = vpack.c.bf16 %v263_v12, %v255_v11  ;;  %v257_v15 = vld [vmem:[%s1203_s7 + $0x10] sm:$0xff]  ;;  %v272_v17 = vld [vmem:[%s1203_s7 + $0x88] sm:$0xff]  ;;  %v274_v20 = vld [vmem:[%s1203_s7 + $0x98] sm:$0xff] }
  0x16   : > { %v265_v16 = vld [vmem:[%s1203_s7 + $0x50] sm:$0xff]  ;;  %v280_v19 = vld [vmem:[%s1203_s7 + $0xc8] sm:$0xff]  ;;  %v282_v21 = vld [vmem:[%s1203_s7 + $0xd8] sm:$0xff] }
  0x17   : > { %1023 = vmatprep.subr.bf16.mxu0 %v1022_v9  ;;  %v1040_v18 = vpack.c.bf16 %v265_v16, %v257_v15  ;;  %1039 = vmatprep.subr.bf16.mxu1 %v1038_v13  ;;  %v1026_v22 = vpack.c.bf16 %v280_v19, %v272_v17  ;;  %v1042_v23 = vpack.c.bf16 %v282_v21, %v274_v20  ;;  %v271_v24 = vld [vmem:[%s1203_s7 + $0x80] sm:$0xff]  ;;  %v273_v26 = vld [vmem:[%s1203_s7 + $0x90] sm:$0xff]  ;;  %v288_v29 = vld [vmem:[%s1203_s7 + $0x108] sm:$0xff] }
  0x18   : > { %1025 = vmatpush1.bf16.msra.mxu0 %v1024_v14  ;;  %v279_v25 = vld [vmem:[%s1203_s7 + $0xc0] sm:$0xff]  ;;  %v281_v28 = vld [vmem:[%s1203_s7 + $0xd0] sm:$0xff]  ;;  %v296_v30 = vld [vmem:[%s1203_s7 + $0x148] sm:$0xff] }
  0x19   : > { %1041 = vmatpush1.bf16.msra.mxu1 %v1040_v18  ;;  %v1028_v27 = vpack.c.bf16 %v279_v25, %v271_v24  ;;  %1027 = vmatprep.subr.bf16.mxu0 %v1026_v22  ;;  %v1044_v31 = vpack.c.bf16 %v281_v28, %v273_v26  ;;  %v1030_v32 = vpack.c.bf16 %v296_v30, %v288_v29  ;;  %v290_v33 = vld [vmem:[%s1203_s7 + $0x118] sm:$0xff]  ;;  %v287_v35 = vld [vmem:[%s1203_s7 + $0x100] sm:$0xff]  ;;  %v289_v38 = vld [vmem:[%s1203_s7 + $0x110] sm:$0xff] }
  0x1a   : > { %1043 = vmatprep.subr.bf16.mxu1 %v1042_v23  ;;  %v298_v34 = vld [vmem:[%s1203_s7 + $0x158] sm:$0xff]  ;;  %v295_v37 = vld [vmem:[%s1203_s7 + $0x140] sm:$0xff]  ;;  %v297_v39 = vld [vmem:[%s1203_s7 + $0x150] sm:$0xff] }
  0x1b   : > { %v1046_v36 = vpack.c.bf16 %v298_v34, %v290_v33  ;;  %v1032_v40 = vpack.c.bf16 %v295_v37, %v287_v35  ;;  %v304_v41 = vld [vmem:[%s1203_s7 + $0x188] sm:$0xff]  ;;  %v306_v43 = vld [vmem:[%s1203_s7 + $0x198] sm:$0xff]  ;;  %v1048_v44 = vpack.c.bf16 %v297_v39, %v289_v38  ;;  %v303_v47 = vld [vmem:[%s1203_s7 + $0x180] sm:$0xff] }
  0x1c   : > { %1029 = vmatpush1.bf16.msra.mxu0 %v1028_v27  ;;  %v312_v42 = vld [vmem:[%s1203_s7 + $0x1c8] sm:$0xff]  ;;  %v314_v46 = vld [vmem:[%s1203_s7 + $0x1d8] sm:$0xff]  ;;  %v311_v48 = vld [vmem:[%s1203_s7 + $0x1c0] sm:$0xff] }
  0x1d   : > { %1045 = vmatpush1.bf16.msra.mxu1 %v1044_v31  ;;  %1031 = vmatprep.subr.bf16.mxu0 %v1030_v32  ;;  %v1034_v45 = vpack.c.bf16 %v312_v42, %v304_v41  ;;  %v1050_v49 = vpack.c.bf16 %v314_v46, %v306_v43  ;;  %v305_v50 = vld [vmem:[%s1203_s7 + $0x190] sm:$0xff]  ;;  %v1036_v52 = vpack.c.bf16 %v311_v48, %v303_v47  ;;  %v320_v54 = vld [vmem:[%s1203_s7 + $0x208] sm:$0x3f]  ;;  %v322_v55 = vld [vmem:[%s1203_s7 + $0x218] sm:$0x3f] }
  0x1e   : > { %1047 = vmatprep.subr.bf16.mxu1 %v1046_v36  ;;  %v313_v51 = vld [vmem:[%s1203_s7 + $0x1d0] sm:$0xff]  ;;  %v260_v56 = vld [vmem:[%s1203_s7 + $0x28] sm:$0xff]  ;;  %v319_v57 = vld [vmem:[%s1203_s7 + $0x200] sm:$0x3f] }
  0x1f   : > { %v1052_v53 = vpack.c.bf16 %v313_v51, %v305_v50  ;;  %v268_v58 = vld [vmem:[%s1203_s7 + $0x68] sm:$0xff]  ;;  %v262_v59 = vld [vmem:[%s1203_s7 + $0x38] sm:$0xff]  ;;  %v259_v62 = vld [vmem:[%s1203_s7 + $0x20] sm:$0xff] }
  0x20   : > { %1033 = vmatpush1.bf16.msra.mxu0 %v1032_v40  ;;  %v270_v60 = vld [vmem:[%s1203_s7 + $0x78] sm:$0xff]  ;;  %v267_v63 = vld [vmem:[%s1203_s7 + $0x60] sm:$0xff]  ;;  %v261_v0 = vld [vmem:[%s1203_s7 + $0x30] sm:$0xff]  ;;  %v1054_v6 = vpack.c.bf16 %v268_v58, %v260_v56 }
  0x21   : > { %1049 = vmatpush1.bf16.msra.mxu1 %v1048_v44  ;;  %1035 = vmatprep.subr.bf16.mxu0 %v1034_v45  ;;  %v269_v2 = vld [vmem:[%s1203_s7 + $0x70] sm:$0xff]  ;;  %v276_v3 = vld [vmem:[%s1203_s7 + $0xa8] sm:$0xff]  ;;  %v278_v7 = vld [vmem:[%s1203_s7 + $0xb8] sm:$0xff]  ;;  %v1070_v9 = vpack.c.bf16 %v270_v60, %v262_v59  ;;  %v1056_v10 = vpack.c.bf16 %v267_v63, %v259_v62  ;;  %v722_v59 = vlaneseq }
  0x22   : > { %1051 = vmatprep.subr.bf16.mxu1 %v1050_v49  ;;  %v284_v4 = vld [vmem:[%s1203_s7 + $0xe8] sm:$0xff]  ;;  %v321_v5 = vld [vmem:[%s1203_s7 + $0x210] sm:$0x3f]  ;;  %v286_v8 = vld [vmem:[%s1203_s7 + $0xf8] sm:$0xff]  ;;  %v1072_v11 = vpack.c.bf16 %v269_v2, %v261_v0 }
  0x23   : > { %v1058_v12 = vpack.c.bf16 %v284_v4, %v276_v3  ;;  %v275_v13 = vld [vmem:[%s1203_s7 + $0xa0] sm:$0xff]  ;;  %v277_v15 = vld [vmem:[%s1203_s7 + $0xb0] sm:$0xff]  ;;  %v1074_v16 = vpack.c.bf16 %v286_v8, %v278_v7  ;;  %v292_v18 = vld [vmem:[%s1203_s7 + $0x128] sm:$0xff] }
  0x24   : > { %1037 = vmatpush1.bf16.msra.mxu0 %v1036_v52  ;;  %v283_v14 = vld [vmem:[%s1203_s7 + $0xe0] sm:$0xff]  ;;  %v285_v17 = vld [vmem:[%s1203_s7 + $0xf0] sm:$0xff]  ;;  %v300_v19 = vld [vmem:[%s1203_s7 + $0x168] sm:$0xff] }
  0x25   : > { %1053 = vmatpush1.bf16.msra.mxu1 %v1052_v53  ;;  %989 = vmatprep.subr.msk.mxu0 %vm337_vm0, %v320_v54  ;;  %v294_v20 = vld [vmem:[%s1203_s7 + $0x138] sm:$0xff]  ;;  %v1060_v22 = vpack.c.bf16 %v283_v14, %v275_v13  ;;  %v1076_v23 = vpack.c.bf16 %v285_v17, %v277_v15  ;;  %v1062_v24 = vpack.c.bf16 %v300_v19, %v292_v18  ;;  %v291_v25 = vld [vmem:[%s1203_s7 + $0x120] sm:$0xff]  ;;  %v293_v27 = vld [vmem:[%s1203_s7 + $0x130] sm:$0xff] }
  0x26   : > { %992 = vmatprep.subr.msk.mxu1 %vm337_vm0, %v322_v55  ;;  %v302_v21 = vld [vmem:[%s1203_s7 + $0x178] sm:$0xff]  ;;  %v299_v26 = vld [vmem:[%s1203_s7 + $0x160] sm:$0xff]  ;;  %v301_v29 = vld [vmem:[%s1203_s7 + $0x170] sm:$0xff] }
  0x27   : > { %v1078_v28 = vpack.c.bf16 %v302_v21, %v294_v20  ;;  %v308_v30 = vld [vmem:[%s1203_s7 + $0x1a8] sm:$0xff]  ;;  %v310_v32 = vld [vmem:[%s1203_s7 + $0x1b8] sm:$0xff]  ;;  %v1064_v34 = vpack.c.bf16 %v299_v26, %v291_v25  ;;  %v1080_v35 = vpack.c.bf16 %v301_v29, %v293_v27  ;;  %v307_v37 = vld [vmem:[%s1203_s7 + $0x1a0] sm:$0xff] }
  0x28   : > { %990 = vmatpush1.msk.msra.mxu0 %vm337_vm0, %v319_v57  ;;  %v316_v31 = vld [vmem:[%s1203_s7 + $0x1e8] sm:$0xff]  ;;  %v318_v33 = vld [vmem:[%s1203_s7 + $0x1f8] sm:$0xff]  ;;  %v315_v38 = vld [vmem:[%s1203_s7 + $0x1e0] sm:$0xff] }
  0x29   : > { %993 = vmatpush1.msk.msra.mxu1 %vm337_vm0, %v321_v5  ;;  %991 = vmatmul.mubr.msk.f32.vlgmr.msra.gmra.mrb[0].mxu0 %vm333_vm1, %v1247_v61  ;;  %v1066_v36 = vpack.c.bf16 %v316_v31, %v308_v30  ;;  %v1082_v39 = vpack.c.bf16 %v318_v33, %v310_v32  ;;  %v309_v40 = vld [vmem:[%s1203_s7 + $0x1b0] sm:$0xff]  ;;  %v1068_v42 = vpack.c.bf16 %v315_v38, %v307_v37  ;;  %v324_v43 = vld [vmem:[%s1203_s7 + $0x228] sm:$0x3f]  ;;  %v326_v44 = vld [vmem:[%s1203_s7 + $0x238] sm:$0x3f]  ;;  %v1310_v5 = vshrl.u32 %v722_v59, 7 }
  0x2a   : > { %994 = vmatmul.mubr.msk.f32.vlgmr.msra.gmra.mrb[0].mxu1 %vm333_vm1, %v1247_v61  ;;  %1055 = vmatprep.subr.bf16.mxu0 %v1054_v6  ;;  %v317_v41 = vld [vmem:[%s1203_s7 + $0x1f0] sm:$0xff]  ;;  %v323_v45 = vld [vmem:[%s1203_s7 + $0x220] sm:$0x3f] }
  0x2b   : > { %1071 = vmatprep.subr.bf16.mxu1 %v1070_v9  ;;  %1057 = vmatpush1.bf16.msra.mxu0 %v1056_v10  ;;  %v325_v46 = vld [vmem:[%s1203_s7 + $0x230] sm:$0x3f]  ;;  %v840_v47 = vld [vmem:[%s1344_s5] sm:$0xff]  ;;  %v724_v14 = vsub.s32 0, %v1310_v5 }
  0x2c   : > { %1073 = vmatpush1.bf16.msra.mxu1 %v1072_v11  ;;  %1059 = vmatprep.subr.bf16.mxu0 %v1058_v12 }
  0x2d   : > { %1075 = vmatprep.subr.bf16.mxu1 %v1074_v16  ;;  %568 = vmatprep.mubr.f32.mxu0 %v1140_v1 }
  0x2e   : > { %639 = vmatprep.mubr.f32.mxu1 %v1140_v1  ;;  %v1084_v1 = vpack.c.bf16 %v317_v41, %v309_v40 }
  0x2f   : > { %1061 = vmatpush1.bf16.msra.mxu0 %v1060_v22 }
  0x30   : > { %1077 = vmatpush1.bf16.msra.mxu1 %v1076_v23  ;;  %1063 = vmatprep.subr.bf16.mxu0 %v1062_v24 }
  0x31   : > { %1079 = vmatprep.subr.bf16.mxu1 %v1078_v28 }
  0x33   : > { %1065 = vmatpush1.bf16.msra.mxu0 %v1064_v34 }
  0x34   : > { %1081 = vmatpush1.bf16.msra.mxu1 %v1080_v35  ;;  %1067 = vmatprep.subr.bf16.mxu0 %v1066_v36 }
  0x35   : > { %1083 = vmatprep.subr.bf16.mxu1 %v1082_v39 }
  0x37   : > { %1069 = vmatpush1.bf16.msra.mxu0 %v1068_v42 }
  0x38   : > { %1085 = vmatpush1.bf16.msra.mxu1 %v1084_v1  ;;  %995 = vmatprep.subr.msk.mxu0 %vm337_vm0, %v324_v43 }
  0x39   : > { %998 = vmatprep.subr.msk.mxu1 %vm337_vm0, %v326_v44 }
  0x3b   : > { %996 = vmatpush1.msk.msra.mxu0 %vm337_vm0, %v323_v45 }
  0x3c   : > { %999 = vmatpush1.msk.msra.mxu1 %vm337_vm0, %v325_v46  ;;  %997 = vmatmul.mubr.msk.f32.vlgmr.msra.gmra.mrb[2].mxu0 %vm333_vm1, %v1247_v61 }
  0x3d   : > { %1000 = vmatmul.mubr.msk.f32.vlgmr.msra.gmra.mrb[2].mxu1 %vm333_vm1, %v1247_v61  ;;  %1019 = vmatprep.mubr.msk.f32.mxu0 %vm842_vm2, %v840_v47 }
  0x89   : > { %v331_v48 = vpop.permute.xlu0 %330  ;;  %v720_v17 = vpop.permute.xlu1 %719 }
  0x8a   : > { %v1313_v24 = vrot.slane %v720_v17, %v724_v14 }
  0x8d   : > { %v1304_v56 = vpop.permute.xlu0 %657 }
  0xfc   : > { %v428_v49 = vpop.f32.mrb[0].mxu0 }
  0xfd   : > { %v429_v50 = vadd.f32 %v428_v49, %v331_v48  ;;  %v499_v51 = vpop.f32.mrb[0].mxu1  ;;  %v430_v52 = vpop.f32.mrb[1].mxu0 }
  0xfe   : > { %v500_v53 = vadd.f32 %v499_v51, %v331_v48  ;;  %v431_v54 = vadd.f32 %v430_v52, %v331_v48  ;;  %v501_v55 = vpop.f32.mrb[1].mxu1 }
  0xff   : > { %v646_v57 = vmax.f32 %v429_v50, 0.0  ;;  %v502_v58 = vadd.f32 %v501_v55, %v331_v48 }
 0x100   : > { %v648_v60 = vmax.f32 %v500_v53, 0.0  ;;  %v647_v61 = vmax.f32 %v431_v54, 0.0 }
 0x101   : > { %v649_v62 = vmax.f32 %v502_v58, 0.0  ;;  %v660_v63 = vmul.f32 %v1304_v56, %v646_v57 }
 0x102   : > { %v661_v0 = vmul.f32 %v1304_v56, %v647_v61  ;;  %v662_v2 = vmul.f32 %v1304_v56, %v648_v60 }
 0x103   : > { %v663_v3 = vmul.f32 %v1304_v56, %v649_v62  ;;  %v668_v4 = vrot.slane %v660_v63, 4 }
 0x104   : > { %v674_v6 = vrot.slane %v661_v0, 4  ;;  %v680_v7 = vrot.slane %v662_v2, 4 }
 0x105   : > { %v669_v8 = vadd.f32 %v668_v4, %v660_v63  ;;  %v686_v9 = vrot.slane %v663_v3, 4 }
 0x106   : > { %v675_v10 = vadd.f32 %v674_v6, %v661_v0  ;;  %v681_v11 = vadd.f32 %v680_v7, %v662_v2 }
 0x107   : > { %v670_v12 = vrot.slane %v669_v8, 2  ;;  %v687_v13 = vadd.f32 %v686_v9, %v663_v3 }
 0x108   : > { %v676_v15 = vrot.slane %v675_v10, 2  ;;  %v682_v16 = vrot.slane %v681_v11, 2 }
 0x109   : > { %v671_v18 = vadd.f32 %v670_v12, %v669_v8  ;;  %v688_v19 = vrot.slane %v687_v13, 2 }
 0x10a   : > { %v677_v20 = vadd.f32 %v676_v15, %v675_v10  ;;  %v683_v21 = vadd.f32 %v682_v16, %v681_v11 }
 0x10b   : > { %v672_v22 = vrot.slane %v671_v18, 1  ;;  %v689_v23 = vadd.f32 %v688_v19, %v687_v13 }
 0x10c   : > { %v678_v25 = vrot.slane %v677_v20, 1  ;;  %v684_v26 = vrot.slane %v683_v21, 1 }
 0x10d   : > { %v673_v27 = vadd.f32 %v672_v22, %v671_v18  ;;  %v690_v28 = vrot.slane %v689_v23, 1 }
 0x10e   : > { %v679_v29 = vadd.f32 %v678_v25, %v677_v20  ;;  %v685_v30 = vadd.f32 %v684_v26, %v683_v21  ;;  %v1142_v25 = vmov 1966171168  }
 0x10f   : > { %v691_v31 = vadd.f32 %v690_v28, %v689_v23  ;;  %v570_v32 = vpop.f32.mrb[2].mxu0  ;;  %v726_v33 = vadd.f32 %v1313_v24, %v673_v27  ;;  %v795_v26 = vunpack.c.l.s4 %v1142_v25 }
 0x110   : > { %v571_v34 = vadd.f32 %v570_v32, %v331_v48  ;;  %v641_v35 = vpop.f32.mrb[2].mxu1  ;;  %v572_v36 = vpop.f32.mrb[3].mxu0  ;;  %v727_v37 = vadd.f32 %v1313_v24, %v679_v29  ;;  %v728_v38 = vadd.f32 %v1313_v24, %v685_v30 }
 0x111   : > { %v642_v39 = vadd.f32 %v641_v35, %v331_v48  ;;  %v573_v40 = vadd.f32 %v572_v36, %v331_v48  ;;  %v643_v41 = vpop.f32.mrb[3].mxu1  ;;  %v729_v42 = vadd.f32 %v1313_v24, %v691_v31  ;;  %v1001_v1 = vmul.f32 -1.442695, %v726_v33 }
 0x112   : > { %v650_v43 = vmax.f32 %v571_v34, 0.0  ;;  %v644_v44 = vadd.f32 %v643_v41, %v331_v48  ;;  %v1002_v45 = vmul.f32 -1.442695, %v727_v37  ;;  %v1003_v46 = vmul.f32 -1.442695, %v728_v38 }
 0x113   : > { %v652_v47 = vmax.f32 %v642_v39, 0.0  ;;  %v651_v49 = vmax.f32 %v573_v40, 0.0  ;;  %1100 = vpow2.f32 %v1001_v1  ;;  %v1004_v50 = vmul.f32 -1.442695, %v729_v42 }
 0x114   : > { %v664_v51 = vmul.f32 %v1304_v56, %v650_v43  ;;  %v653_v52 = vmax.f32 %v644_v44, 0.0  ;;  %1102 = vpow2.f32 %v1002_v45  ;;  %v796_v35 = vunpack.c.0.s8 %v795_v26 }
 0x115   : > { %v666_v53 = vmul.f32 %v1304_v56, %v652_v47  ;;  %v665_v54 = vmul.f32 %v1304_v56, %v651_v49  ;;  %1104 = vpow2.f32 %v1003_v46 }
 0x116   : > { %v692_v55 = vrot.slane %v664_v51, 4  ;;  %v667_v57 = vmul.f32 %v1304_v56, %v653_v52  ;;  %1106 = vpow2.f32 %v1004_v50  ;;  %v799_v38 = vsub.s32 %v796_v35, %v1310_v5 }
 0x117   : > { %v704_v48 = vrot.slane %v666_v53, 4  ;;  %v698_v58 = vrot.slane %v665_v54, 4 }
 0x118   : > { %v693_v59 = vadd.f32 %v692_v55, %v664_v51  ;;  %v710_v60 = vrot.slane %v667_v57, 4 }
 0x119   : > { %v705_v61 = vadd.f32 %v704_v48, %v666_v53  ;;  %v699_v62 = vadd.f32 %v698_v58, %v665_v54 }
 0x11a   : > { %v694_v63 = vrot.slane %v693_v59, 2  ;;  %v711_v0 = vadd.f32 %v710_v60, %v667_v57 }
 0x11b   : > { %v706_v2 = vrot.slane %v705_v61, 2  ;;  %v700_v3 = vrot.slane %v699_v62, 2 }
 0x11c   : > { %v695_v4 = vadd.f32 %v694_v63, %v693_v59  ;;  %v712_v6 = vrot.slane %v711_v0, 2 }
 0x11d   : > { %v1101_v7 = vpop.eup %1100  ;;  %v707_v8 = vadd.f32 %v706_v2, %v705_v61  ;;  %v701_v9 = vadd.f32 %v700_v3, %v699_v62  ;;  %v841_v2 = vld [vmem:[%s1344_s5 + $0x8] sm:$0xff] }
 0x11e   : > { %v1103_v10 = vpop.eup %1102  ;;  %v696_v11 = vrot.slane %v695_v4, 1  ;;  %v713_v12 = vadd.f32 %v712_v6, %v711_v0  ;;  %v758_v56 = vadd.f32 1.0, %v1101_v7 }
 0x11f   : > { %v1105_v13 = vpop.eup %1104  ;;  %v708_v14 = vrot.slane %v707_v8, 1  ;;  %v702_v15 = vrot.slane %v701_v9, 1  ;;  %v759_v16 = vadd.f32 1.0, %v1103_v10 }
 0x120   : > { %v1107_v17 = vpop.eup %1106  ;;  %v697_v18 = vadd.f32 %v696_v11, %v695_v4  ;;  %v714_v19 = vrot.slane %v713_v12, 1  ;;  %v760_v20 = vadd.f32 1.0, %v1105_v13  ;;  %1108 = vrcp.f32 %v758_v56 }
 0x121   : > { %v709_v21 = vadd.f32 %v708_v14, %v707_v8  ;;  %v703_v22 = vadd.f32 %v702_v15, %v701_v9  ;;  %v761_v23 = vadd.f32 1.0, %v1107_v17  ;;  %1110 = vrcp.f32 %v759_v16 }
 0x122   : > { %v730_v27 = vadd.f32 %v1313_v24, %v697_v18  ;;  %v715_v28 = vadd.f32 %v714_v19, %v713_v12  ;;  %1112 = vrcp.f32 %v760_v20 }
 0x123   : > { %v732_v29 = vadd.f32 %v1313_v24, %v709_v21  ;;  %v731_v30 = vadd.f32 %v1313_v24, %v703_v22  ;;  %1114 = vrcp.f32 %v761_v23 }
 0x124   : > { %v1005_v31 = vmul.f32 -1.442695, %v730_v27  ;;  %v733_v32 = vadd.f32 %v1313_v24, %v715_v28 }
 0x125   : > { %v1007_v33 = vmul.f32 -1.442695, %v732_v29  ;;  %v1006_v34 = vmul.f32 -1.442695, %v731_v30 }
 0x126   : > { %1116 = vpow2.f32 %v1005_v31  ;;  %v1008_v36 = vmul.f32 -1.442695, %v733_v32 }
 0x127   : > { %1118 = vpow2.f32 %v1007_v33 }
 0x128   : > { %1120 = vpow2.f32 %v1006_v34 }
 0x129   : > { %1122 = vpow2.f32 %v1008_v36 }
 0x12a   : > { %v1109_v37 = vpop.eup %1108 }
 0x12b   : > { %v1111_v39 = vpop.eup %1110 }
 0x12c   : > { %v1113_v40 = vpop.eup %1112  ;;  %v790_v41 = vcombine.low %v1109_v37, %v1111_v39 }
 0x12d   : > { %v1115_v42 = vpop.eup %1114 }
 0x12e   : > { %v791_v1 = vcombine.low %v1113_v40, %v1115_v42  ;;  %v800_v43 = vrot.slane %v790_v41, %v799_v38 }
 0x130   : > { %v1117_v44 = vpop.eup %1116  ;;  %v807_v45 = vrot.slane %v791_v1, %v799_v38 }
 0x131   : > { %v1119_v24 = vpop.eup %1118  ;;  %v762_v46 = vadd.f32 1.0, %v1117_v44 }
 0x132   : > { %v1121_v47 = vpop.eup %1120  ;;  %v764_v49 = vadd.f32 1.0, %v1119_v24  ;;  %v822_v50 = vcombine.low %v800_v43, %v807_v45 }
 0x133   : > { %v1123_v51 = vpop.eup %1122  ;;  %1124 = vrcp.f32 %v762_v46  ;;  %v763_v52 = vadd.f32 1.0, %v1121_v47 }
 0x134   : > { %1126 = vrcp.f32 %v764_v49  ;;  %v765_v53 = vadd.f32 1.0, %v1123_v51  ;;  %v830_v62 = vrot.slane %v822_v50, %v799_v38 }
 0x135   : > { %1128 = vrcp.f32 %v763_v52 }
 0x136   : > { %1130 = vrcp.f32 %v765_v53 }
 0x13d   : > { %v1125_v5 = vpop.eup %1124 }
 0x13e   : > { %v1127_v54 = vpop.eup %1126 }
 0x13f   : > { %v1129_v55 = vpop.eup %1128 }
 0x140   : > { %v1131_v57 = vpop.eup %1130  ;;  %v792_v48 = vcombine.low %v1125_v5, %v1129_v55 }
 0x141   : > { %v793_v58 = vcombine.low %v1127_v54, %v1131_v57 }
 0x142   : > { %v814_v59 = vrot.slane %v792_v48, %v799_v38 }
 0x143   : > { %v821_v60 = vrot.slane %v793_v58, %v799_v38 }
 0x145   : > { %v823_v61 = vcombine.low %v814_v59, %v821_v60 }
 0x147   : > { %v837_v63 = vrot.slane %v823_v61, %v799_v38 }
 0x149   : > { %v838_v0 = vcombine.low %v830_v62, %v837_v63 }
 0x14b   : > { %1017 = vmatprep.subr.mxu0 %v838_v0 }
 0x14c   : > { %1018 = vmatpush3.msra.mxu0 %v838_v0 }
 0x14d   : > { %1020 = vmatmul.mubr.msk.f32.vlgmr.msra.gmra.mrb[4].mxu0 %vm842_vm2, %v841_v2 }
 0x220   : > { %v1021_v3 = vpop.f32.mrb[4].mxu0 }
 0x221   : > { %925 = vst [vmem:[%s253_s17 + $0x8] sm:$0xff] %v1021_v3  ;;  %v915_v4 = vpop.f32.mrb[5].mxu0 }
 0x222   : > { %924 = vst [vmem:[%s253_s17] sm:$0xff] %v915_v4 }
 0x223 PF: > { %s18_s23 = sadd.s32 1, %s1138_s23  }
 0x224   : > { %p15_p4 = scmp.ge.s32.totalorder %s18_s23, 4  }
 0x226   :  { %17 = sbr.rel (!%p15_p4) target bundleno = 3 (0x3), region = 74 }

// kernel: attention_gate_pallas.3
= control target key start
LH: loop header
LB: loop body
LE: loop exit
PB: predicated region body
PF: predicated region fallthrough
CT: control target
= control target key end

     0   :  { %s979_s9 = smov 0   ;;  %s981_s10 = smov 0   ;;  %s1237_s0 = inlined_call_operand.vmem [shape: f32[2,8,8192], index: 0, kind: input, shape index: {}]   ;;  %s1238_s1 = inlined_call_operand.vmem [shape: f32[2,1,8192], index: 1, kind: input, shape index: {}]   ;;  %s1239_s2 = inlined_call_operand.vmem [shape: f32[2,8,8192], index: 2, kind: output, shape index: {}]  }
   0x1   :  { %s983_s11 = smov 0  }
   0x2 LB: > { %s31_s12 = sadd.s32 1, %s958_s10  ;;  %p906_p0 = scmp.ge.s32.totalorder %s962_s11, 1  ;;  %s962_s11 = sphi %s983_s11, %s12_s11   ;;  %s958_s10 = sphi %s981_s10, %s1241_s10   ;;  %s954_s9 = sphi %s979_s9, %s1240_s9  }
   0x3   : > { %p33_p1 = scmp.ge.s32.totalorder %s31_s12, 2  ;;  %p164_p2 = scmp.lt.s32.totalorder %s962_s11, 3 }
   0x5   : > { %s1243_s12 = smov (%p33_p1, %s31_s12), 0  ;;  %p165_p3 = pnand %p906_p0, %p164_p2 }
   0x6   : > { %p211_p4 = scmp.lt.s32.totalorder (!%p165_p3), %s954_s9, 1  ;;  %v327_v0 = vlaneseq (!%p165_p3) }
   0x7   : > { %168 = sbr.rel (%p165_p3) target bundleno = 61 (0x3d), region = 28 }
   0x8   : > { %v328_v1 = vshrl.u32 (!%p165_p3), %v327_v0, 7 }
   0xa   : > { %v997_v2 = vsub.s32 (!%p165_p3), 0, %v328_v1  ;;  %v999_v3 = vsub.s32 (!%p165_p3), 1, %v328_v1  ;;  %v1001_v4 = vsub.s32 (!%p165_p3), 2, %v328_v1  ;;  %v1003_v5 = vsub.s32 (!%p165_p3), 3, %v328_v1 }
   0xb   : > { %v1015_v6 = vsub.s32 (!%p165_p3), 4, %v328_v1  ;;  %v1017_v7 = vsub.s32 (!%p165_p3), 5, %v328_v1  ;;  %v1019_v8 = vsub.s32 (!%p165_p3), 6, %v328_v1  ;;  %v1021_v9 = vsub.s32 (!%p165_p3), 7, %v328_v1 }
   0xe   : > { %s1245_s9 = smov (!%p211_p4, %s954_s9), 1 }
   0xf   : > { %s914_s13 = sshll.u32 %s1245_s9, 9  ;;  %s909_s14 = sshll.u32 %s1245_s9, 6 }
  0x10   : > { %s1008_s17 = scalar_lea.vmem %s1237_s0, %s914_s13  ;;  %s1013_s20 = scalar_lea.vmem %s1238_s1, %s909_s14 }
  0x11   : > { %v247_v10 = vld [vmem:[%s1008_s17] sm:$0xff]  ;;  %v248_v12 = vld [vmem:[%s1008_s17 + $0x8] sm:$0xff]  ;;  %v249_v15 = vld [vmem:[%s1008_s17 + $0x10] sm:$0xff]  ;;  %s1036_s23 = scalar_lea.vmem %s1239_s2, %s914_s13 }
  0x12   : > { %v311_v11 = vld [vmem:[%s1013_s20] sm:$0xff]  ;;  %v250_v17 = vld [vmem:[%s1008_s17 + $0x18] sm:$0xff]  ;;  %v252_v21 = vld [vmem:[%s1008_s17 + $0x28] sm:$0xff] }
  0x13   : > { %v330_v13 = vrot.slane %v311_v11, %v997_v2  ;;  %v334_v14 = vrot.slane %v311_v11, %v999_v3  ;;  %v338_v16 = vrot.slane %v311_v11, %v1001_v4  ;;  %v342_v18 = vrot.slane %v311_v11, %v1003_v5  ;;  %v251_v19 = vld [vmem:[%s1008_s17 + $0x20] sm:$0xff]  ;;  %v253_v23 = vld [vmem:[%s1008_s17 + $0x30] sm:$0xff]  ;;  %v254_v25 = vld [vmem:[%s1008_s17 + $0x38] sm:$0xff] }
  0x14   : > { %v346_v20 = vrot.slane %v311_v11, %v1015_v6  ;;  %v350_v22 = vrot.slane %v311_v11, %v1017_v7  ;;  %v354_v24 = vrot.slane %v311_v11, %v1019_v8  ;;  %v358_v26 = vrot.slane %v311_v11, %v1021_v9  ;;  %v255_v31 = vld [vmem:[%s1008_s17 + $0x40] sm:$0xff]  ;;  %v312_v32 = vld [vmem:[%s1013_s20 + $0x8] sm:$0xff]  ;;  %v257_v38 = vld [vmem:[%s1008_s17 + $0x50] sm:$0xff] }
  0x15   : > { %v647_v27 = vmul.f32 %v330_v13, %v247_v10  ;;  %v648_v28 = vmul.f32 %v334_v14, %v248_v12  ;;  %v649_v29 = vmul.f32 %v338_v16, %v249_v15  ;;  %v650_v30 = vmul.f32 %v342_v18, %v250_v17  ;;  %v256_v33 = vld [vmem:[%s1008_s17 + $0x48] sm:$0xff]  ;;  %v258_v39 = vld [vmem:[%s1008_s17 + $0x58] sm:$0xff]  ;;  %v259_v40 = vld [vmem:[%s1008_s17 + $0x60] sm:$0xff] }
  0x16   : > { %v651_v34 = vmul.f32 %v346_v20, %v251_v19  ;;  %v652_v35 = vmul.f32 %v350_v22, %v252_v21  ;;  %v653_v36 = vmul.f32 %v354_v24, %v253_v23  ;;  %v654_v37 = vmul.f32 %v358_v26, %v254_v25  ;;  %v260_v45 = vld [vmem:[%s1008_s17 + $0x68] sm:$0xff]  ;;  %v261_v46 = vld [vmem:[%s1008_s17 + $0x70] sm:$0xff]  ;;  %v262_v47 = vld [vmem:[%s1008_s17 + $0x78] sm:$0xff] }
  0x17   : > { %711 = vst [vmem:[%s1036_s23] sm:$0xff] %v647_v27  ;;  %712 = vst [vmem:[%s1036_s23 + $0x8] sm:$0xff] %v648_v28  ;;  %v362_v41 = vrot.slane %v312_v32, %v997_v2  ;;  %v366_v42 = vrot.slane %v312_v32, %v999_v3  ;;  %v370_v43 = vrot.slane %v312_v32, %v1001_v4  ;;  %v313_v52 = vld [vmem:[%s1013_s20 + $0x10] sm:$0xff]  ;;  %v263_v57 = vld [vmem:[%s1008_s17 + $0x80] sm:$0xff] }
  0x18   : > { %713 = vst [vmem:[%s1036_s23 + $0x10] sm:$0xff] %v649_v29  ;;  %714 = vst [vmem:[%s1036_s23 + $0x18] sm:$0xff] %v650_v30  ;;  %v374_v44 = vrot.slane %v312_v32, %v1003_v5  ;;  %v378_v48 = vrot.slane %v312_v32, %v1015_v6  ;;  %v382_v49 = vrot.slane %v312_v32, %v1017_v7  ;;  %v264_v58 = vld [vmem:[%s1008_s17 + $0x88] sm:$0xff]  ;;  %v265_v63 = vld [vmem:[%s1008_s17 + $0x90] sm:$0xff] }
  0x19   : > { %715 = vst [vmem:[%s1036_s23 + $0x20] sm:$0xff] %v651_v34  ;;  %716 = vst [vmem:[%s1036_s23 + $0x28] sm:$0xff] %v652_v35  ;;  %v386_v50 = vrot.slane %v312_v32, %v1019_v8  ;;  %v390_v51 = vrot.slane %v312_v32, %v1021_v9  ;;  %v655_v53 = vmul.f32 %v362_v41, %v255_v31  ;;  %v266_v0 = vld [vmem:[%s1008_s17 + $0x98] sm:$0xff]  ;;  %v267_v1 = vld [vmem:[%s1008_s17 + $0xa0] sm:$0xff] }
  0x1a   : > { %717 = vst [vmem:[%s1036_s23 + $0x30] sm:$0xff] %v653_v36  ;;  %718 = vst [vmem:[%s1036_s23 + $0x38] sm:$0xff] %v654_v37  ;;  %v656_v54 = vmul.f32 %v366_v42, %v256_v33  ;;  %v657_v55 = vmul.f32 %v370_v43, %v257_v38  ;;  %v658_v56 = vmul.f32 %v374_v44, %v258_v39  ;;  %v268_v14 = vld [vmem:[%s1008_s17 + $0xa8] sm:$0xff]  ;;  %v269_v15 = vld [vmem:[%s1008_s17 + $0xb0] sm:$0xff] }
  0x1b   : > { %v659_v59 = vmul.f32 %v378_v48, %v259_v40  ;;  %v660_v60 = vmul.f32 %v382_v49, %v260_v45  ;;  %v661_v61 = vmul.f32 %v386_v50, %v261_v46  ;;  %v662_v62 = vmul.f32 %v390_v51, %v262_v47  ;;  %719 = vst [vmem:[%s1036_s23 + $0x40] sm:$0xff] %v655_v53  ;;  %v270_v16 = vld [vmem:[%s1008_s17 + $0xb8] sm:$0xff]  ;;  %v271_v26 = vld [vmem:[%s1008_s17 + $0xc0] sm:$0xff]  ;;  %v272_v27 = vld [vmem:[%s1008_s17 + $0xc8] sm:$0xff] }
  0x1c   : > { %720 = vst [vmem:[%s1036_s23 + $0x48] sm:$0xff] %v656_v54  ;;  %721 = vst [vmem:[%s1036_s23 + $0x50] sm:$0xff] %v657_v55  ;;  %v394_v10 = vrot.slane %v313_v52, %v997_v2  ;;  %v398_v11 = vrot.slane %v313_v52, %v999_v3  ;;  %v402_v12 = vrot.slane %v313_v52, %v1001_v4  ;;  %v314_v21 = vld [vmem:[%s1013_s20 + $0x18] sm:$0xff]  ;;  %v273_v32 = vld [vmem:[%s1008_s17 + $0xd0] sm:$0xff] }
  0x1d   : > { %722 = vst [vmem:[%s1036_s23 + $0x58] sm:$0xff] %v658_v56  ;;  %v406_v13 = vrot.slane %v313_v52, %v1003_v5  ;;  %723 = vst [vmem:[%s1036_s23 + $0x60] sm:$0xff] %v659_v59  ;;  %v410_v17 = vrot.slane %v313_v52, %v1015_v6  ;;  %v414_v18 = vrot.slane %v313_v52, %v1017_v7  ;;  %v274_v33 = vld [vmem:[%s1008_s17 + $0xd8] sm:$0xff]  ;;  %v275_v34 = vld [vmem:[%s1008_s17 + $0xe0] sm:$0xff] }
  0x1e   : > { %724 = vst [vmem:[%s1036_s23 + $0x68] sm:$0xff] %v660_v60  ;;  %725 = vst [vmem:[%s1036_s23 + $0x70] sm:$0xff] %v661_v61  ;;  %v418_v19 = vrot.slane %v313_v52, %v1019_v8  ;;  %v422_v20 = vrot.slane %v313_v52, %v1021_v9  ;;  %v663_v22 = vmul.f32 %v394_v10, %v263_v57  ;;  %v276_v39 = vld [vmem:[%s1008_s17 + $0xe8] sm:$0xff]  ;;  %v277_v40 = vld [vmem:[%s1008_s17 + $0xf0] sm:$0xff] }
  0x1f   : > { %726 = vst [vmem:[%s1036_s23 + $0x78] sm:$0xff] %v662_v62  ;;  %v664_v23 = vmul.f32 %v398_v11, %v264_v58  ;;  %v665_v24 = vmul.f32 %v402_v12, %v265_v63  ;;  %v666_v25 = vmul.f32 %v406_v13, %v266_v0  ;;  %v667_v28 = vmul.f32 %v410_v17, %v267_v1  ;;  %v278_v41 = vld [vmem:[%s1008_s17 + $0xf8] sm:$0xff]  ;;  %v315_v46 = vld [vmem:[%s1013_s20 + $0x20] sm:$0xff]  ;;  %v280_v52 = vld [vmem:[%s1008_s17 + $0x108] sm:$0xff] }
  0x20   : > { %v668_v29 = vmul.f32 %v414_v18, %v268_v14  ;;  %v669_v30 = vmul.f32 %v418_v19, %v269_v15  ;;  %v670_v31 = vmul.f32 %v422_v20, %v270_v16  ;;  %727 = vst [vmem:[%s1036_s23 + $0x80] sm:$0xff] %v663_v22  ;;  %v426_v35 = vrot.slane %v314_v21, %v997_v2  ;;  %v279_v51 = vld [vmem:[%s1008_s17 + $0x100] sm:$0xff]  ;;  %v281_v57 = vld [vmem:[%s1008_s17 + $0x110] sm:$0xff]  ;;  %v282_v58 = vld [vmem:[%s1008_s17 + $0x118] sm:$0xff] }
  0x21   : > { %728 = vst [vmem:[%s1036_s23 + $0x88] sm:$0xff] %v664_v23  ;;  %729 = vst [vmem:[%s1036_s23 + $0x90] sm:$0xff] %v665_v24  ;;  %v430_v36 = vrot.slane %v314_v21, %v999_v3  ;;  %v434_v37 = vrot.slane %v314_v21, %v1001_v4  ;;  %v438_v38 = vrot.slane %v314_v21, %v1003_v5  ;;  %v283_v59 = vld [vmem:[%s1008_s17 + $0x120] sm:$0xff]  ;;  %v284_v0 = vld [vmem:[%s1008_s17 + $0x128] sm:$0xff] }
  0x22   : > { %730 = vst [vmem:[%s1036_s23 + $0x98] sm:$0xff] %v666_v25  ;;  %731 = vst [vmem:[%s1036_s23 + $0xa0] sm:$0xff] %v667_v28  ;;  %v442_v42 = vrot.slane %v314_v21, %v1015_v6  ;;  %v446_v43 = vrot.slane %v314_v21, %v1017_v7  ;;  %v450_v44 = vrot.slane %v314_v21, %v1019_v8  ;;  %v285_v1 = vld [vmem:[%s1008_s17 + $0x130] sm:$0xff]  ;;  %v286_v10 = vld [vmem:[%s1008_s17 + $0x138] sm:$0xff] }
  0x23   : > { %732 = vst [vmem:[%s1036_s23 + $0xa8] sm:$0xff] %v668_v29  ;;  %733 = vst [vmem:[%s1036_s23 + $0xb0] sm:$0xff] %v669_v30  ;;  %v454_v45 = vrot.slane %v314_v21, %v1021_v9  ;;  %v671_v47 = vmul.f32 %v426_v35, %v271_v26  ;;  %v672_v48 = vmul.f32 %v430_v36, %v272_v27  ;;  %v316_v15 = vld [vmem:[%s1013_s20 + $0x28] sm:$0xff]  ;;  %v287_v20 = vld [vmem:[%s1008_s17 + $0x140] sm:$0xff] }
  0x24   : > { %734 = vst [vmem:[%s1036_s23 + $0xb8] sm:$0xff] %v670_v31  ;;  %v673_v49 = vmul.f32 %v434_v37, %v273_v32  ;;  %v674_v50 = vmul.f32 %v438_v38, %v274_v33  ;;  %v675_v53 = vmul.f32 %v442_v42, %v275_v34  ;;  %v676_v54 = vmul.f32 %v446_v43, %v276_v39  ;;  %v288_v21 = vld [vmem:[%s1008_s17 + $0x148] sm:$0xff]  ;;  %v289_v26 = vld [vmem:[%s1008_s17 + $0x150] sm:$0xff]  ;;  %v290_v27 = vld [vmem:[%s1008_s17 + $0x158] sm:$0xff] }
  0x25   : > { %v677_v55 = vmul.f32 %v450_v44, %v277_v40  ;;  %v678_v56 = vmul.f32 %v454_v45, %v278_v41  ;;  %735 = vst [vmem:[%s1036_s23 + $0xc0] sm:$0xff] %v671_v47  ;;  %736 = vst [vmem:[%s1036_s23 + $0xc8] sm:$0xff] %v672_v48  ;;  %v458_v60 = vrot.slane %v315_v46, %v997_v2  ;;  %v291_v28 = vld [vmem:[%s1008_s17 + $0x160] sm:$0xff]  ;;  %v292_v33 = vld [vmem:[%s1008_s17 + $0x168] sm:$0xff] }
  0x26   : > { %737 = vst [vmem:[%s1036_s23 + $0xd0] sm:$0xff] %v673_v49  ;;  %738 = vst [vmem:[%s1036_s23 + $0xd8] sm:$0xff] %v674_v50  ;;  %v462_v61 = vrot.slane %v315_v46, %v999_v3  ;;  %v466_v62 = vrot.slane %v315_v46, %v1001_v4  ;;  %v470_v63 = vrot.slane %v315_v46, %v1003_v5  ;;  %v293_v34 = vld [vmem:[%s1008_s17 + $0x170] sm:$0xff]  ;;  %v294_v35 = vld [vmem:[%s1008_s17 + $0x178] sm:$0xff] }
  0x27   : > { %739 = vst [vmem:[%s1036_s23 + $0xe0] sm:$0xff] %v675_v53  ;;  %740 = vst [vmem:[%s1036_s23 + $0xe8] sm:$0xff] %v676_v54  ;;  %v474_v11 = vrot.slane %v315_v46, %v1015_v6  ;;  %v478_v12 = vrot.slane %v315_v46, %v1017_v7  ;;  %v482_v13 = vrot.slane %v315_v46, %v1019_v8  ;;  %v317_v40 = vld [vmem:[%s1013_s20 + $0x30] sm:$0xff]  ;;  %v295_v45 = vld [vmem:[%s1008_s17 + $0x180] sm:$0xff] }
  0x28   : > { %741 = vst [vmem:[%s1036_s23 + $0xf0] sm:$0xff] %v677_v55  ;;  %742 = vst [vmem:[%s1036_s23 + $0xf8] sm:$0xff] %v678_v56  ;;  %v486_v14 = vrot.slane %v315_v46, %v1021_v9  ;;  %v679_v16 = vmul.f32 %v458_v60, %v279_v51  ;;  %v680_v17 = vmul.f32 %v462_v61, %v280_v52  ;;  %v296_v46 = vld [vmem:[%s1008_s17 + $0x188] sm:$0xff]  ;;  %v297_v51 = vld [vmem:[%s1008_s17 + $0x190] sm:$0xff] }
  0x29   : > { %v681_v18 = vmul.f32 %v466_v62, %v281_v57  ;;  %v682_v19 = vmul.f32 %v470_v63, %v282_v58  ;;  %v683_v22 = vmul.f32 %v474_v11, %v283_v59  ;;  %v684_v23 = vmul.f32 %v478_v12, %v284_v0  ;;  %v298_v52 = vld [vmem:[%s1008_s17 + $0x198] sm:$0xff]  ;;  %v299_v53 = vld [vmem:[%s1008_s17 + $0x1a0] sm:$0xff]  ;;  %v300_v58 = vld [vmem:[%s1008_s17 + $0x1a8] sm:$0xff] }
  0x2a   : > { %v685_v24 = vmul.f32 %v482_v13, %v285_v1  ;;  %v686_v25 = vmul.f32 %v486_v14, %v286_v10  ;;  %743 = vst [vmem:[%s1036_s23 + $0x100] sm:$0xff] %v679_v16  ;;  %744 = vst [vmem:[%s1036_s23 + $0x108] sm:$0xff] %v680_v17  ;;  %v490_v29 = vrot.slane %v316_v15, %v997_v2  ;;  %v301_v59 = vld [vmem:[%s1008_s17 + $0x1b0] sm:$0xff]  ;;  %v302_v60 = vld [vmem:[%s1008_s17 + $0x1b8] sm:$0xff] }
  0x2b   : > { %745 = vst [vmem:[%s1036_s23 + $0x110] sm:$0xff] %v681_v18  ;;  %746 = vst [vmem:[%s1036_s23 + $0x118] sm:$0xff] %v682_v19  ;;  %v494_v30 = vrot.slane %v316_v15, %v999_v3  ;;  %v498_v31 = vrot.slane %v316_v15, %v1001_v4  ;;  %v502_v32 = vrot.slane %v316_v15, %v1003_v5  ;;  %v318_v1 = vld [vmem:[%s1013_s20 + $0x38] sm:$0xff]  ;;  %v303_v14 = vld [vmem:[%s1008_s17 + $0x1c0] sm:$0xff] }
  0x2c   : > { %747 = vst [vmem:[%s1036_s23 + $0x120] sm:$0xff] %v683_v22  ;;  %748 = vst [vmem:[%s1036_s23 + $0x128] sm:$0xff] %v684_v23  ;;  %v506_v36 = vrot.slane %v316_v15, %v1015_v6  ;;  %v510_v37 = vrot.slane %v316_v15, %v1017_v7  ;;  %v514_v38 = vrot.slane %v316_v15, %v1019_v8  ;;  %v307_v22 = vld [vmem:[%s1008_s17 + $0x1e0] sm:$0xff] }
  0x2d   : > { %749 = vst [vmem:[%s1036_s23 + $0x130] sm:$0xff] %v685_v24  ;;  %750 = vst [vmem:[%s1036_s23 + $0x138] sm:$0xff] %v686_v25  ;;  %v518_v39 = vrot.slane %v316_v15, %v1021_v9  ;;  %v687_v41 = vmul.f32 %v490_v29, %v287_v20  ;;  %v688_v42 = vmul.f32 %v494_v30, %v288_v21  ;;  %v304_v15 = vld [vmem:[%s1008_s17 + $0x1c8] sm:$0xff]  ;;  %v305_v20 = vld [vmem:[%s1008_s17 + $0x1d0] sm:$0xff] }
  0x2e   : > { %v689_v43 = vmul.f32 %v498_v31, %v289_v26  ;;  %v690_v44 = vmul.f32 %v502_v32, %v290_v27  ;;  %v691_v47 = vmul.f32 %v506_v36, %v291_v28  ;;  %v692_v48 = vmul.f32 %v510_v37, %v292_v33  ;;  %v306_v21 = vld [vmem:[%s1008_s17 + $0x1d8] sm:$0xff]  ;;  %v308_v27 = vld [vmem:[%s1008_s17 + $0x1e8] sm:$0xff]  ;;  %v309_v28 = vld [vmem:[%s1008_s17 + $0x1f0] sm:$0xff] }
  0x2f   : > { %v693_v49 = vmul.f32 %v514_v38, %v293_v34  ;;  %v694_v50 = vmul.f32 %v518_v39, %v294_v35  ;;  %751 = vst [vmem:[%s1036_s23 + $0x140] sm:$0xff] %v687_v41  ;;  %752 = vst [vmem:[%s1036_s23 + $0x148] sm:$0xff] %v688_v42  ;;  %v522_v54 = vrot.slane %v317_v40, %v997_v2  ;;  %v310_v29 = vld [vmem:[%s1008_s17 + $0x1f8] sm:$0xff] }
  0x30   : > { %753 = vst [vmem:[%s1036_s23 + $0x150] sm:$0xff] %v689_v43  ;;  %754 = vst [vmem:[%s1036_s23 + $0x158] sm:$0xff] %v690_v44  ;;  %v526_v55 = vrot.slane %v317_v40, %v999_v3  ;;  %v530_v56 = vrot.slane %v317_v40, %v1001_v4  ;;  %v534_v57 = vrot.slane %v317_v40, %v1003_v5 }
  0x31   : > { %755 = vst [vmem:[%s1036_s23 + $0x160] sm:$0xff] %v691_v47  ;;  %756 = vst [vmem:[%s1036_s23 + $0x168] sm:$0xff] %v692_v48  ;;  %v538_v61 = vrot.slane %v317_v40, %v1015_v6  ;;  %v542_v62 = vrot.slane %v317_v40, %v1017_v7  ;;  %v546_v63 = vrot.slane %v317_v40, %v1019_v8 }
  0x32   : > { %757 = vst [vmem:[%s1036_s23 + $0x170] sm:$0xff] %v693_v49  ;;  %758 = vst [vmem:[%s1036_s23 + $0x178] sm:$0xff] %v694_v50  ;;  %v550_v0 = vrot.slane %v317_v40, %v1021_v9  ;;  %v695_v10 = vmul.f32 %v522_v54, %v295_v45  ;;  %v696_v11 = vmul.f32 %v526_v55, %v296_v46 }
  0x33   : > { %v697_v12 = vmul.f32 %v530_v56, %v297_v51  ;;  %v698_v13 = vmul.f32 %v534_v57, %v298_v52  ;;  %v699_v16 = vmul.f32 %v538_v61, %v299_v53  ;;  %v700_v17 = vmul.f32 %v542_v62, %v300_v58 }
  0x34   : > { %v701_v18 = vmul.f32 %v546_v63, %v301_v59  ;;  %v702_v19 = vmul.f32 %v550_v0, %v302_v60  ;;  %759 = vst [vmem:[%s1036_s23 + $0x180] sm:$0xff] %v695_v10  ;;  %760 = vst [vmem:[%s1036_s23 + $0x188] sm:$0xff] %v696_v11  ;;  %v554_v23 = vrot.slane %v318_v1, %v997_v2 }
  0x35   : > { %761 = vst [vmem:[%s1036_s23 + $0x190] sm:$0xff] %v697_v12  ;;  %762 = vst [vmem:[%s1036_s23 + $0x198] sm:$0xff] %v698_v13  ;;  %v558_v24 = vrot.slane %v318_v1, %v999_v3  ;;  %v562_v25 = vrot.slane %v318_v1, %v1001_v4  ;;  %v566_v26 = vrot.slane %v318_v1, %v1003_v5 }
  0x36   : > { %763 = vst [vmem:[%s1036_s23 + $0x1a0] sm:$0xff] %v699_v16  ;;  %764 = vst [vmem:[%s1036_s23 + $0x1a8] sm:$0xff] %v700_v17  ;;  %v570_v30 = vrot.slane %v318_v1, %v1015_v6  ;;  %v574_v2 = vrot.slane %v318_v1, %v1017_v7  ;;  %v578_v3 = vrot.slane %v318_v1, %v1019_v8 }
  0x37   : > { %765 = vst [vmem:[%s1036_s23 + $0x1b0] sm:$0xff] %v701_v18  ;;  %766 = vst [vmem:[%s1036_s23 + $0x1b8] sm:$0xff] %v702_v19  ;;  %v582_v4 = vrot.slane %v318_v1, %v1021_v9  ;;  %v703_v5 = vmul.f32 %v554_v23, %v303_v14  ;;  %v704_v31 = vmul.f32 %v558_v24, %v304_v15 }
  0x38   : > { %v705_v32 = vmul.f32 %v562_v25, %v305_v20  ;;  %v706_v33 = vmul.f32 %v566_v26, %v306_v21  ;;  %v707_v34 = vmul.f32 %v570_v30, %v307_v22  ;;  %v708_v35 = vmul.f32 %v574_v2, %v308_v27 }
  0x39   : > { %v709_v36 = vmul.f32 %v578_v3, %v309_v28  ;;  %v710_v37 = vmul.f32 %v582_v4, %v310_v29  ;;  %767 = vst [vmem:[%s1036_s23 + $0x1c0] sm:$0xff] %v703_v5  ;;  %768 = vst [vmem:[%s1036_s23 + $0x1c8] sm:$0xff] %v704_v31 }
  0x3a   : > { %769 = vst [vmem:[%s1036_s23 + $0x1d0] sm:$0xff] %v705_v32  ;;  %770 = vst [vmem:[%s1036_s23 + $0x1d8] sm:$0xff] %v706_v33 }
  0x3b   : > { %771 = vst [vmem:[%s1036_s23 + $0x1e0] sm:$0xff] %v707_v34  ;;  %772 = vst [vmem:[%s1036_s23 + $0x1e8] sm:$0xff] %v708_v35 }
  0x3c   : > { %773 = vst [vmem:[%s1036_s23 + $0x1f0] sm:$0xff] %v709_v36  ;;  %774 = vst [vmem:[%s1036_s23 + $0x1f8] sm:$0xff] %v710_v37 }
  0x3d PF: > { %s12_s11 = sadd.s32 1, %s962_s11   ;;  %s1240_s9 = smov %s958_s10 }
  0x3e   : > { %p9_p5 = scmp.ge.s32.totalorder %s12_s11, 4   ;;  %s1241_s10 = smov %s1243_s12 }
  0x40   :  { %11 = sbr.rel (!%p9_p5) target bundleno = 2 (0x2), region = 61 }

</bundles_post_ra>
